<compile_context>
chip_gen: v7x
topology: tpu7x:2x2x1
jax: 0.10.0
libtpu: 0.0.40
codegen_flags: <defaults>
</compile_context>

<pallas_src>
import jax
import jax.numpy as jnp
from jax.experimental import pallas as pl
from jax.experimental.pallas import tpu as pltpu

EPS = 1e-5
MAX_TS = 512   # spatial (lane) tile cap, multiple of 128


def _round_up(x, n):
    return ((x + n - 1) // n) * n


def _vmem_capacity_bytes():
    """Physical VMEM capacity; conservative fallback if the query fails."""
    try:
        info = pltpu.get_tpu_info()
        return int(getattr(info, "vmem_capacity_bytes", 64 * 1024 * 1024))
    except Exception:
        return 64 * 1024 * 1024   # v7x-safe default


def _linlayer_kernel(x_ref, w_ref, shift_ref, o_ref):
    # x_ref:     (1, K, TS)  f32   activation tile (channels-first)
    # w_ref:     (TO, K)     bf16  BN-scale-folded weight tile
    # shift_ref: (TO, 1)     f32   beta + (bias - running_mean) * scale
    # o_ref:     (1, TO, TS)       output tile
    x = x_ref[0].astype(jnp.bfloat16)                       # in-kernel cast (VPU)
    y = jnp.dot(w_ref[...], x, preferred_element_type=jnp.float32)   # (TO, TS)
    o_ref[0] = jnp.maximum(y + shift_ref[...], 0.0).astype(o_ref.dtype)


def linlayer_forward(x, weight, bias, gamma, beta, running_mean, running_var,
                     *, eps=EPS, out_dtype=None):
    """Fused Linear + BatchNorm1d(eval) + ReLU, channels-first.

    x:      [B, in_dim, S]
    weight: [out_dim, in_dim] (PyTorch nn.Linear convention)
    bias, gamma, beta, running_mean, running_var: [out_dim]
    returns [B, out_dim, S] in out_dtype (defaults to x.dtype; pass
    jnp.bfloat16 for a bf16 output path that halves store traffic).
    """
    B, in_dim, S = x.shape
    out_dim = weight.shape[0]
    f32 = jnp.float32
    out_dtype = x.dtype if out_dtype is None else out_dtype
    out_bytes = jnp.dtype(out_dtype).itemsize

    # ---- per-generation budget -------------------------------------------
    vmem_cap = _vmem_capacity_bytes()
    if vmem_cap >= 100 * 1024 * 1024:        # v5e / v6e: 128 MiB physical VMEM
        vmem_limit = 96 * 1024 * 1024
    else:                                    # v7x: 64 MiB per TensorCore
        vmem_limit = 40 * 1024 * 1024

    # ---- parameter glue (one-time, tiny): fold BN scale + linear bias -----
    # NOTE: folding the BN scale into bf16 weights can amplify quantization
    # error when gamma/sqrt(var+eps) is large; keep scale in an f32 epilogue
    # if accuracy regressions appear.
    scale = gamma.astype(f32) / jnp.sqrt(running_var.astype(f32) + eps)  # [out]
    w_folded = weight.astype(f32) * scale[:, None]                       # [out, in]
    shift = beta.astype(f32) + (bias.astype(f32) - running_mean.astype(f32)) * scale

    # ---- tiling ------------------------------------------------------------
    k_pad = _round_up(in_dim, 8)             # sublane granule for the f32 x tile

    # Spatial tile: full S when it fits (legal full-dim block), else a
    # 128-aligned tile capped so the double-buffered f32 x tile stays bounded.
    ts_cap = max(128, ((vmem_limit // 4) // (k_pad * 4 * 2)) // 128 * 128)
    max_ts = min(MAX_TS, ts_cap)
    if S <= max_ts:
        ts, s_pad = S, S
    else:
        ts = max_ts
        s_pad = _round_up(S, ts)

    def _fits(to_, ts_):
        w = to_ * k_pad * 2 * 2               # bf16 weight tile, double-buffered
        xb = k_pad * ts_ * 4 * 2              # f32 activation tile
        ob = to_ * ts_ * out_bytes * 2        # output tile
        sh = to_ * 4 * 2                      # shift
        return (w + xb + ob + sh) <= int(vmem_limit * 0.75)

    out_pad8 = _round_up(out_dim, 8)
    if _fits(out_pad8, ts):
        to, out_pad = out_pad8, out_pad8      # weight fully VMEM-resident
    else:
        to = 8
        for cand in (512, 256, 128, 64, 32, 16, 8):   # 256/512 keep MXU N full
            if _fits(cand, ts):
                to = cand
                break
        out_pad = _round_up(out_dim, to)

    # ---- zero padding (no-ops for aligned shapes) --------------------------
    if k_pad != in_dim or s_pad != S:
        x = jnp.pad(x, ((0, 0), (0, k_pad - in_dim), (0, s_pad - S)))
    if k_pad != in_dim or out_pad != out_dim:
        w_folded = jnp.pad(w_folded, ((0, out_pad - out_dim), (0, k_pad - in_dim)))
        shift = jnp.pad(shift, (0, out_pad - out_dim))
    w_bf = w_folded.astype(jnp.bfloat16)
    shift = shift.reshape(out_pad, 1)

    # Grid: out-axis outermost so the weight block index changes least often
    # (re-fetched only out_tiles times; once when fully resident).
    grid = (out_pad // to, B, s_pad // ts)

    out = pl.pallas_call(
        _linlayer_kernel,
        out_shape=jax.ShapeDtypeStruct((B, out_pad, s_pad), out_dtype),
        grid=grid,
        in_specs=[
            pl.BlockSpec((1, k_pad, ts), lambda j, b, s: (b, 0, s)),
            pl.BlockSpec((to, k_pad), lambda j, b, s: (j, 0)),
            pl.BlockSpec((to, 1), lambda j, b, s: (j, 0)),
        ],
        out_specs=pl.BlockSpec((1, to, ts), lambda j, b, s: (b, j, s)),
        compiler_params=pltpu.CompilerParams(
            dimension_semantics=("parallel", "parallel", "parallel"),
            vmem_limit_bytes=int(vmem_limit),
        ),
    )(x, w_bf, shift)

    return out[:, :out_dim, :S]


# ----------------------------- references ---------------------------------
def _reference_f32(x, weight, bias, gamma, beta, mean, var, eps=EPS):
    # Straight PyTorch-semantics (eval-mode BN) reference in f32.
    y = jnp.einsum("bis,oi->bos", x, weight) + bias[None, :, None]
    y = (y - mean[None, :, None]) / jnp.sqrt(var[None, :, None] + eps)
    y = y * gamma[None, :, None] + beta[None, :, None]
    return jnp.maximum(y, 0.0)


def _reference_bf16(x, weight, bias, gamma, beta, mean, var, eps=EPS):
    # Same math, but with the kernel's bf16-quantized operands / f32 accumulate.
    scale = gamma / jnp.sqrt(var + eps)
    wq = (weight.astype(jnp.float32) * scale[:, None]).astype(jnp.bfloat16).astype(jnp.float32)
    xq = x.astype(jnp.bfloat16).astype(jnp.float32)
    shift = beta + (bias - mean) * scale
    y = jnp.einsum("bks,ok->bos", xq, wq) + shift[None, :, None]
    return jnp.maximum(y, 0.0)


if __name__ == "__main__":
    key = jax.random.PRNGKey(0)
    k_x, k_w, k_b, k_g, k_be, k_m, k_v = jax.random.split(key, 7)

    B, IN_DIM, S, OUT_DIM = 2, 32, 8, 64

    x = jax.random.normal(k_x, (B, IN_DIM, S), dtype=jnp.float32)
    weight = jax.random.normal(k_w, (OUT_DIM, IN_DIM), dtype=jnp.float32) / IN_DIM ** 0.5
    bias = 0.1 * jax.random.normal(k_b, (OUT_DIM,), dtype=jnp.float32)
    gamma = 1.0 + 0.1 * jax.random.normal(k_g, (OUT_DIM,), dtype=jnp.float32)
    beta = 0.1 * jax.random.normal(k_be, (OUT_DIM,), dtype=jnp.float32)
    running_mean = 0.1 * jax.random.normal(k_m, (OUT_DIM,), dtype=jnp.float32)
    running_var = jnp.abs(1.0 + 0.1 * jax.random.normal(k_v, (OUT_DIM,), dtype=jnp.float32))

    out = linlayer_forward(x, weight, bias, gamma, beta, running_mean, running_var)
    out = jax.block_until_ready(out)
    assert out.shape == (B, OUT_DIM, S), out.shape

    # Tight check vs a reference using the same bf16-quantized operands.
    ref_q = _reference_bf16(x, weight, bias, gamma, beta, running_mean, running_var)
    assert jnp.allclose(out, ref_q, atol=1e-3, rtol=1e-3), "mismatch vs bf16-quantized reference"

    # Loose check vs the full-f32 reference (only bf16 operand quantization error).
    ref_f = _reference_f32(x, weight, bias, gamma, beta, running_mean, running_var)
    assert jnp.allclose(out, ref_f, atol=5e-2, rtol=5e-2), "mismatch vs f32 reference"

    print("KERNEL_OK")
</pallas_src>

<mosaic_0001>
module attributes {stable_mosaic.version = 11 : i64} {
  func.func @_linlayer_kernel(%arg0: i32, %arg1: i32, %arg2: i32, %arg3: memref<1x32x8xf32, #tpu.memory_space<vmem>>, %arg4: memref<64x32xbf16, #tpu.memory_space<vmem>>, %arg5: memref<64x1xf32, #tpu.memory_space<vmem>>, %arg6: memref<1x64x8xf32, #tpu.memory_space<vmem>>) attributes {dimension_semantics = [#tpu.dimension_semantics<parallel>, #tpu.dimension_semantics<parallel>, #tpu.dimension_semantics<parallel>], iteration_bounds = array<i64: 1, 2, 1>, scalar_prefetch = 0 : i64, scratch_operands = 0 : i64, tpu.core_type = #tpu.core_type<tc>, window_params = [{transform_indices = @transform_0, window_bounds = array<i64: 1, 32, 8>}, {transform_indices = @transform_1, window_bounds = array<i64: 64, 32>}, {transform_indices = @transform_2, window_bounds = array<i64: 64, 1>}, {transform_indices = @transform_3, window_bounds = array<i64: 1, 64, 8>}]} {
    %c0 = arith.constant 0 : index
    %c0_0 = arith.constant 0 : index
    %c0_1 = arith.constant 0 : index
    %0 = vector.load %arg3[%c0, %c0_0, %c0_1] : memref<1x32x8xf32, #tpu.memory_space<vmem>>, vector<1x32x8xf32>
    %1 = vector.shape_cast %0 : vector<1x32x8xf32> to vector<32x8xf32>
    %2 = arith.truncf %1 : vector<32x8xf32> to vector<32x8xbf16>
    %c0_2 = arith.constant 0 : index
    %c0_3 = arith.constant 0 : index
    %3 = vector.load %arg4[%c0_2, %c0_3] : memref<64x32xbf16, #tpu.memory_space<vmem>>, vector<64x32xbf16>
    %cst = arith.constant dense<0.000000e+00> : vector<64x8xf32>
    %4 = tpu.matmul %3, %2, %cst {dimension_numbers = #tpu.dot_dimension_numbers<[1], [0], [0], [1], [0, 0, 1, 1], [], []>} : vector<64x32xbf16>, vector<32x8xbf16>, vector<64x8xf32> -> vector<64x8xf32>
    %c0_4 = arith.constant 0 : index
    %c0_5 = arith.constant 0 : index
    %5 = vector.load %arg5[%c0_4, %c0_5] : memref<64x1xf32, #tpu.memory_space<vmem>>, vector<64x1xf32>
    %6 = vector.broadcast %5 : vector<64x1xf32> to vector<64x8xf32>
    %7 = arith.addf %4, %6 : vector<64x8xf32>
    %cst_6 = arith.constant 0.000000e+00 : f32
    %8 = vector.broadcast %cst_6 : f32 to vector<64x8xf32>
    %9 = arith.maximumf %7, %8 : vector<64x8xf32>
    %c0_7 = arith.constant 0 : index
    %c0_8 = arith.constant 0 : index
    %c0_9 = arith.constant 0 : index
    %10 = vector.load %arg6[%c0_7, %c0_8, %c0_9] : memref<1x64x8xf32, #tpu.memory_space<vmem>>, vector<1x64x8xf32>
    %11 = vector.shape_cast %10 : vector<1x64x8xf32> to vector<64x8xf32>
    %12 = vector.shape_cast %9 : vector<64x8xf32> to vector<1x64x8xf32>
    tpu.vector_store %arg6[%c0_7, %c0_8, %c0_9], %12 {strides = array<i32>} : memref<1x64x8xf32, #tpu.memory_space<vmem>>, vector<1x64x8xf32>,
    return
  }
  func.func @transform_0(%arg0: i32, %arg1: i32, %arg2: i32) -> (i32, i32, i32) {
    %c0_i32 = arith.constant 0 : i32
    %c0_i32_0 = arith.constant 0 : i32
    return %arg1, %c0_i32, %arg2 : i32, i32, i32
  }
  func.func @transform_1(%arg0: i32, %arg1: i32, %arg2: i32) -> (i32, i32) {
    %c0_i32 = arith.constant 0 : i32
    %c0_i32_0 = arith.constant 0 : i32
    return %arg0, %c0_i32 : i32, i32
  }
  func.func @transform_2(%arg0: i32, %arg1: i32, %arg2: i32) -> (i32, i32) {
    %c0_i32 = arith.constant 0 : i32
    %c0_i32_0 = arith.constant 0 : i32
    return %arg0, %c0_i32 : i32, i32
  }
  func.func @transform_3(%arg0: i32, %arg1: i32, %arg2: i32) -> (i32, i32, i32) {
    %c0_i32 = arith.constant 0 : i32
    return %arg1, %arg0, %arg2 : i32, i32, i32
  }
}

</mosaic_0001>

<bundles_post_ra>
// kernel: tpu_custom_call.1
= control target key start
LH: loop header
LB: loop body
LE: loop exit
PB: predicated region body
PF: predicated region fallthrough
CT: control target
= control target key end

     0   :  { %s693_s12 = smov 0   ;;  %s695_s13 = smov 0   ;;  %s778_s0 = inlined_call_operand.vmem [shape: f32[2,32,8], index: 0, kind: input, shape index: {}]   ;;  %s779_s1 = inlined_call_operand.vmem [shape: bf16[64,32], index: 1, kind: input, shape index: {}]   ;;  %s780_s2 = inlined_call_operand.vmem [shape: f32[64,1], index: 2, kind: input, shape index: {}]   ;;  %s781_s3 = inlined_call_operand.vmem [shape: f32[2,64,8], index: 3, kind: output, shape index: {}]  }
   0x1   :  { %s697_s14 = smov 0  }
   0x2 LB: > { %s28_s15 = sadd.s32 1, %s666_s13  ;;  %p578_p0 = scmp.ge.s32.totalorder %s670_s14, 1  ;;  %s670_s14 = sphi %s697_s14, %s13_s14   ;;  %s666_s13 = sphi %s695_s13, %s783_s13   ;;  %s662_s12 = sphi %s693_s12, %s782_s12  }
   0x3   : > { %p30_p1 = scmp.ge.s32.totalorder %s28_s15, 2  ;;  %p187_p2 = scmp.lt.s32.totalorder %s670_s14, 3 }
   0x5   : > { %s785_s15 = smov (%p30_p1, %s28_s15), 0  ;;  %p188_p3 = pnand %p578_p0, %p187_p2 }
   0x6   : > { %p231_p4 = scmp.lt.s32.totalorder (!%p188_p3), %s662_s12, 1  ;;  %v644_v0 = vld [vmem:[%s779_s1] sm:$0xff] (!%p188_p3)   ;;  %vm347_vm0 = vcmask (!%p188_p3), 261120   ;;  %v645_v1 = vld [vmem:[%s779_s1 + $0x10] sm:$0xff] (!%p188_p3)   ;;  %v672_v2 = vmov (!%p188_p3), 0   ;;  %v282_v11 = vld [vmem:[%s780_s2 + $0x18] sm:$0xff] (!%p188_p3) }
   0x7   : > { %191 = sbr.rel (%p188_p3) target bundleno = 248 (0xf8), region = 32  ;;  %605 = vmatprep.mubr.msk.bf16.mxu0 (!%p188_p3), %vm347_vm0, %v644_v0  ;;  %609 = vmatprep.mubr.msk.bf16.mxu1 (!%p188_p3), %vm347_vm0, %v645_v1  ;;  %v281_v3 = vld [vmem:[%s780_s2 + $0x10] sm:$0xff] (!%p188_p3)  ;;  %v279_v4 = vld [vmem:[%s780_s2] sm:$0xff] (!%p188_p3)  ;;  %v280_v12 = vld [vmem:[%s780_s2 + $0x8] sm:$0xff] (!%p188_p3)  ;;  %vm433_vm1 = vcmask (!%p188_p3), 64512  }
   0x8   : > { %643 = vset.pattern.permute.xlu1 (!%p188_p3), %v672_v2  ;;  %642 = vset.pattern.permute.xlu0 (!%p188_p3), %v672_v2  ;;  %v646_v13 = vld [vmem:[%s779_s1 + $0x8] sm:$0xff] (!%p188_p3)   ;;  %v647_v14 = vld [vmem:[%s779_s1 + $0x18] sm:$0xff] (!%p188_p3)   ;;  %v283_v16 = vld [vmem:[%s780_s2 + $0x20] sm:$0xff] (!%p188_p3) }
   0x9   : > { %299 = vperm.xlu1 (!%p188_p3), %643, %v281_v3   ;;  %289 = vperm.xlu0 (!%p188_p3), %642, %v279_v4   ;;  %v284_v15 = vld [vmem:[%s780_s2 + $0x28] sm:$0xff] (!%p188_p3)  ;;  %v286_v17 = vld [vmem:[%s780_s2 + $0x38] sm:$0xff] (!%p188_p3)  ;;  %v285_v18 = vld [vmem:[%s780_s2 + $0x30] sm:$0xff] (!%p188_p3) }
   0xd   : > { %304 = vperm.xlu1 (!%p188_p3), %643, %v282_v11   ;;  %294 = vperm.xlu0 (!%p188_p3), %642, %v280_v12  }
   0xe   : > { %s787_s12 = smov (!%p231_p4, %s662_s12), 1 }
   0xf   : > { %s593_s20 = sshll.u32 %s787_s12, 5  ;;  %s594_s21 = sshll.u32 %s787_s12, 6 }
  0x10   : > { %s238_s27 = scalar_lea.vmem %s778_s0, %s593_s20  ;;  %s262_s24 = scalar_lea.vmem %s781_s3, %s594_s21 }
  0x11   : > { %v265_v5 = vld [vmem:[%s238_s27] sm:$0xff]  ;;  %v266_v6 = vld [vmem:[%s238_s27 + $0x8] sm:$0xff]  ;;  %v267_v7 = vld [vmem:[%s238_s27 + $0x10] sm:$0xff]  ;;  %314 = vperm.xlu1 %643, %v284_v15   ;;  %309 = vperm.xlu0 %642, %v283_v16  }
  0x12   : > { %v269_v8 = vpack.c.bf16 %v266_v6, %v265_v5  ;;  %v268_v9 = vld [vmem:[%s238_s27 + $0x18] sm:$0xff] }
  0x13   : > { %v270_v10 = vpack.c.bf16 %v268_v9, %v267_v7 }
  0x14   : > { %601 = vmatprep.subr.bf16.mxu0 %v269_v8  ;;  %613 = vmatprep.subr.bf16.mxu1 %v269_v8 }
  0x15   : > { %602 = vmatpush3.bf16.msra.mxu0 %v269_v8  ;;  %615 = vmatpush3.bf16.msra.mxu1 %v269_v8 }
  0x16   : > { %603 = vmatprep.subr.bf16.mxu0 %v270_v10  ;;  %614 = vmatprep.subr.bf16.mxu1 %v270_v10 }
  0x17   : > { %324 = vperm.xlu1 %643, %v286_v17   ;;  %319 = vperm.xlu0 %642, %v285_v18  }
  0x19   : > { %604 = vmatpush3.bf16.msra.mxu0 %v270_v10  ;;  %616 = vmatpush3.bf16.msra.mxu1 %v270_v10 }
  0x1c   : > { %606 = vmatmul.mubr.msk.bf16.vlgmr.msra.gmra.mrb[0].mxu0 %vm347_vm0, %v646_v13  ;;  %610 = vmatmul.mubr.msk.bf16.vlgmr.msra.gmra.mrb[0].mxu1 %vm347_vm0, %v647_v14 }
  0x88   : > { %v300_v19 = vpop.permute.xlu1 %299  ;;  %v290_v20 = vpop.permute.xlu0 %289 }
  0x8c   : > { %v305_v21 = vpop.permute.xlu1 %304  ;;  %v295_v22 = vpop.permute.xlu0 %294 }
  0x90   : > { %v315_v23 = vpop.permute.xlu1 %314  ;;  %v310_v24 = vpop.permute.xlu0 %309 }
  0x96   : > { %v325_v25 = vpop.permute.xlu1 %324  ;;  %v320_v26 = vpop.permute.xlu0 %319 }
  0xef   : > { %v607_v27 = vpop.f32.mrb[0].mxu0  ;;  %v611_v28 = vpop.f32.mrb[0].mxu1 }
  0xf0   : > { %v403_v29 = vadd.f32 %v607_v27, %v300_v19  ;;  %v419_v30 = vadd.f32 %v611_v28, %v320_v26  ;;  %v394_v31 = vpop.f32.mrb[1].mxu0  ;;  %v410_v32 = vpop.f32.mrb[1].mxu1 }
  0xf1   : > { %v395_v33 = vadd.f32 %v394_v31, %v290_v20  ;;  %v411_v34 = vadd.f32 %v410_v32, %v310_v24  ;;  %v608_v35 = vpop.f32.mrb[2].mxu0  ;;  %v612_v36 = vpop.f32.mrb[2].mxu1 }
  0xf2   : > { %v427_v37 = vmax.f32 %v403_v29, 0.0  ;;  %v431_v38 = vmax.f32 %v419_v30, 0.0  ;;  %v406_v39 = vadd.f32 %v608_v35, %v305_v21  ;;  %v422_v40 = vadd.f32 %v612_v36, %v325_v25  ;;  %v397_v41 = vpop.f32.mrb[3].mxu0  ;;  %v413_v42 = vpop.f32.mrb[3].mxu1 }
  0xf3   : > { %v425_v43 = vmax.f32 %v395_v33, 0.0  ;;  %v429_v44 = vmax.f32 %v411_v34, 0.0  ;;  %v398_v45 = vadd.f32 %v397_v41, %v295_v22  ;;  %v414_v46 = vadd.f32 %v413_v42, %v315_v23 }
  0xf4   : > { %436 = vst.msk [vmem:[%s262_s24 + $0x10] sm:$0xff] %vm433_vm1, %v427_v37  ;;  %440 = vst.msk [vmem:[%s262_s24 + $0x30] sm:$0xff] %vm433_vm1, %v431_v38  ;;  %v428_v47 = vmax.f32 %v406_v39, 0.0  ;;  %v432_v48 = vmax.f32 %v422_v40, 0.0 }
  0xf5   : > { %434 = vst.msk [vmem:[%s262_s24] sm:$0xff] %vm433_vm1, %v425_v43  ;;  %438 = vst.msk [vmem:[%s262_s24 + $0x20] sm:$0xff] %vm433_vm1, %v429_v44  ;;  %v426_v49 = vmax.f32 %v398_v45, 0.0  ;;  %v430_v50 = vmax.f32 %v414_v46, 0.0 }
  0xf6   : > { %437 = vst.msk [vmem:[%s262_s24 + $0x18] sm:$0xff] %vm433_vm1, %v428_v47  ;;  %441 = vst.msk [vmem:[%s262_s24 + $0x38] sm:$0xff] %vm433_vm1, %v432_v48 }
  0xf7   : > { %435 = vst.msk [vmem:[%s262_s24 + $0x8] sm:$0xff] %vm433_vm1, %v426_v49  ;;  %439 = vst.msk [vmem:[%s262_s24 + $0x28] sm:$0xff] %vm433_vm1, %v430_v50 }
  0xf8 PF: > { %s13_s14 = sadd.s32 1, %s670_s14   ;;  %s782_s12 = smov %s666_s13 }
  0xf9   : > { %p10_p5 = scmp.ge.s32.totalorder %s13_s14, 4   ;;  %s783_s13 = smov %s785_s15 }
  0xfb   :  { %12 = sbr.rel (!%p10_p5) target bundleno = 2 (0x2), region = 68 }

</bundles_post_ra>
